<compile_context>
chip_gen: v7x
topology: tpu7x:2x2x1
jax: 0.10.0
libtpu: 0.0.40
codegen_flags: <defaults>
</compile_context>

<pallas_src>
import jax
import jax.numpy as jnp
from jax.experimental import pallas as pl
from jax.experimental.pallas import tpu as pltpu


def _round_up(a, b):
    return ((a + b - 1) // b) * b


def _classify_kernel(x_ref, w_ref, b_ref, o_ref, acc_ref):
    # x_ref:   [bn, tc, HW]  input tile (any float dtype)
    # w_ref:   [tc, C2]      1x1-conv weight tile, pre-scaled by 1/HW (f32)
    # b_ref:   [1, C2]       bias (f32)
    # o_ref:   [bn, C2]      output tile
    # acc_ref: [bn, C2]      f32 accumulator, persists across the C1 grid axis
    @pl.when(pl.program_id(1) == 0)
    def _():
        acc_ref[...] = jnp.zeros_like(acc_ref)

    x = x_ref[...].astype(jnp.float32)
    # AdaptiveAvgPool2d(1): sum over the lane-dense spatial axis
    # (the 1/HW normalization is folded into w_ref in the wrapper).
    pooled = jnp.sum(x, axis=-1)                                   # [bn, tc]
    acc_ref[...] += jnp.dot(pooled, w_ref[...],
                            preferred_element_type=jnp.float32)
    o_ref[...] = (acc_ref[...] + b_ref[...]).astype(o_ref.dtype)


def classify_forward(x, weight, bias):
    """
    x:      [N, C1, H, W] float (f32 or bf16)
    weight: [C2, C1, 1, 1] float (1x1 conv weight)
    bias:   [C2] float
    returns [N, C2] in x.dtype  ==  Flatten(Conv2d(AdaptiveAvgPool2d(1)(x)))
    """
    N, C1, H, W = x.shape
    C2 = weight.shape[0]
    HW = H * W
    out_dtype = x.dtype
    itemsize = jnp.dtype(x.dtype).itemsize

    # Lane-dense reshape (free layout plumbing for contiguous NCHW input).
    x2 = x.reshape(N, C1, HW)
    # Pre-transpose conv weight and fold in the 1/HW pooling scale.
    w_t = weight.reshape(C2, C1).T.astype(jnp.float32) * (1.0 / float(HW))
    b2 = bias.reshape(1, C2).astype(jnp.float32)

    # ---- Per-generation VMEM budget (v7x: 64 MiB, v5e/v6e: 128 MiB). ----
    try:
        vmem_cap = int(pltpu.get_tpu_info().vmem_capacity_bytes)
    except Exception:
        vmem_cap = 64 * 1024 * 1024  # conservative fallback (v7x-sized)
    x_slab_budget = int(vmem_cap * 0.40)   # double-buffered x slab budget

    hw_pad = _round_up(HW, 128)

    def x_block_bytes(tc_, bn_):
        return 2 * bn_ * _round_up(tc_, 8) * hw_pad * itemsize   # 2x: dbl-buffer

    # Channel tile tc: full C1 if an (8, tc, HW) block fits the budget, else the
    # largest divisor of C1 that is a multiple of 8 and fits.  tc | C1 always.
    tc = C1
    if x_block_bytes(C1, 8) > x_slab_budget:
        divisors = [d for d in range(8, C1, 8) if C1 % d == 0]
        for d in sorted(divisors, reverse=True):
            if x_block_bytes(d, 8) <= x_slab_budget:
                tc = d
                break
        else:
            tc = divisors[0] if divisors else C1
    c_blocks = C1 // tc

    # Batch tile bn from the remaining budget.
    bn_cap = max(1, x_slab_budget // (2 * _round_up(tc, 8) * hw_pad * itemsize))
    bn = min(bn_cap, N)
    if N >= 16:
        # Keep >= 2 batch blocks so the "parallel" axis can shard across the
        # two TensorCores on v7x (harmless on single-core v5e/v6e).
        bn = min(bn, _round_up((N + 1) // 2, 8))
    if bn < N:
        bn = max(8, (bn // 8) * 8)   # multi-block => sublane-aligned blocks

    n_full = N // bn
    n_bulk = n_full * bn
    r = N - n_bulk

    # Explicit scoped-VMEM limit with headroom.
    w_bytes = 2 * _round_up(tc, 8) * _round_up(C2, 128) * 4
    o_bytes = 8 * _round_up(max(bn, max(r, 1)), 8) * _round_up(C2, 128) * 4
    vmem_need = x_block_bytes(tc, bn) + w_bytes + o_bytes
    vmem_limit = int(min(vmem_cap * 0.9,
                         max(vmem_need + vmem_need // 4, 32 * 1024 * 1024)))

    out_itemsize = jnp.dtype(out_dtype).itemsize
    cost = pl.CostEstimate(
        flops=2 * N * C1 * HW + 2 * N * C1 * C2,
        transcendentals=0,
        bytes_accessed=(N * C1 * HW * itemsize + C1 * C2 * 4 + C2 * 4
                        + N * C2 * out_itemsize),
    )

    def call(x_in, out_rows, bn_):
        n_blocks = out_rows // bn_
        return pl.pallas_call(
            _classify_kernel,
            out_shape=jax.ShapeDtypeStruct((out_rows, C2), out_dtype),
            grid_spec=pltpu.PrefetchScalarGridSpec(
                num_scalar_prefetch=0,
                grid=(n_blocks, c_blocks),
                in_specs=[
                    pl.BlockSpec((bn_, tc, HW), lambda i, c: (i, c, 0)),
                    pl.BlockSpec((tc, C2), lambda i, c: (c, 0)),
                    pl.BlockSpec((1, C2), lambda i, c: (0, 0)),
                ],
                out_specs=pl.BlockSpec((bn_, C2), lambda i, c: (i, 0)),
                scratch_shapes=[pltpu.VMEM((bn_, C2), jnp.float32)],
            ),
            compiler_params=pltpu.CompilerParams(
                dimension_semantics=("parallel", "arbitrary"),
                vmem_limit_bytes=vmem_limit,
            ),
            cost_estimate=cost,
        )(x_in, w_t, b2)

    # Bulk: exact bn-sized blocks over rows [0, n_bulk) — no padded copy of x.
    out_bulk = call(x2, n_bulk, bn)
    if r == 0:
        return out_bulk
    # Ragged tail (< bn rows): tiny second call on just the remainder.
    out_tail = call(x2[n_bulk:], r, r)
    return jnp.concatenate([out_bulk, out_tail], axis=0)


def _classify_ref(x, weight, bias):
    pooled = jnp.mean(x.astype(jnp.float32), axis=(2, 3))          # [N, C1]
    w2 = weight.reshape(weight.shape[0], -1).astype(jnp.float32)   # [C2, C1]
    return (pooled @ w2.T + bias[None, :].astype(jnp.float32)).astype(x.dtype)


if __name__ == "__main__":
    key = jax.random.PRNGKey(0)
    k1, k2, k3 = jax.random.split(key, 3)

    # Small shapes consistent with the module: batch=2, c1=4, 16x16 spatial, c2=8.
    N, C1, H, W, C2 = 2, 4, 16, 16, 8
    x = jax.random.normal(k1, (N, C1, H, W), dtype=jnp.float32)
    weight = jax.random.normal(k2, (C2, C1, 1, 1), dtype=jnp.float32) * 0.1
    bias = jax.random.normal(k3, (C2,), dtype=jnp.float32) * 0.1

    out = jax.block_until_ready(classify_forward(x, weight, bias))
    ref = jax.block_until_ready(_classify_ref(x, weight, bias))

    assert out.shape == (N, C2), out.shape
    assert out.dtype == x.dtype, out.dtype
    assert jnp.allclose(out, ref, rtol=1e-5, atol=1e-5), (out, ref)
    print("KERNEL_OK")
</pallas_src>

<mosaic_0001>
module attributes {stable_mosaic.version = 11 : i64} {
  func.func @_classify_kernel(%arg0: i32, %arg1: i32, %arg2: memref<2x4x256xf32, #tpu.memory_space<vmem>>, %arg3: memref<4x8xf32, #tpu.memory_space<vmem>>, %arg4: memref<1x8xf32, #tpu.memory_space<vmem>>, %arg5: memref<2x8xf32, #tpu.memory_space<vmem>>, %arg6: memref<2x8xf32, #tpu.memory_space<vmem>>) attributes {dimension_semantics = [#tpu.dimension_semantics<parallel>, #tpu.dimension_semantics<arbitrary>], iteration_bounds = array<i64: 1, 1>, scalar_prefetch = 0 : i64, scratch_operands = 1 : i64, tpu.core_type = #tpu.core_type<tc>, window_params = [{transform_indices = @transform_0, window_bounds = array<i64: 2, 4, 256>}, {transform_indices = @transform_1, window_bounds = array<i64: 4, 8>}, {pipeline_mode = #tpu.pipeline_mode<synchronous>, transform_indices = @transform_2, window_bounds = array<i64: 1, 8>}, {transform_indices = @transform_3, window_bounds = array<i64: 2, 8>}]} {
    %c0_i32 = arith.constant 0 : i32
    %0 = arith.cmpi eq, %arg1, %c0_i32 : i32
    %1 = arith.extui %0 : i1 to i32
    %c0_i32_0 = arith.constant 0 : i32
    %2 = arith.cmpi ne, %1, %c0_i32_0 : i32
    scf.if %2 {
      %cst_16 = arith.constant 0.000000e+00 : f32
      %15 = vector.broadcast %cst_16 : f32 to vector<2x8xf32>
      %c0_17 = arith.constant 0 : index
      %c0_18 = arith.constant 0 : index
      %16 = vector.load %arg6[%c0_17, %c0_18] : memref<2x8xf32, #tpu.memory_space<vmem>>, vector<2x8xf32>
      tpu.vector_store %arg6[%c0_17, %c0_18], %15 {strides = array<i32>} : memref<2x8xf32, #tpu.memory_space<vmem>>, vector<2x8xf32>,
    } else {
    }
    %c0 = arith.constant 0 : index
    %c0_1 = arith.constant 0 : index
    %c0_2 = arith.constant 0 : index
    %3 = vector.load %arg2[%c0, %c0_1, %c0_2] : memref<2x4x256xf32, #tpu.memory_space<vmem>>, vector<2x4x256xf32>
    %cst = arith.constant dense<0.000000e+00> : vector<2x4xf32>
    %4 = vector.multi_reduction <add>, %3, %cst [2] : vector<2x4x256xf32> to vector<2x4xf32>
    %c0_3 = arith.constant 0 : index
    %c0_4 = arith.constant 0 : index
    %5 = vector.load %arg6[%c0_3, %c0_4] : memref<2x8xf32, #tpu.memory_space<vmem>>, vector<2x8xf32>
    %c0_5 = arith.constant 0 : index
    %c0_6 = arith.constant 0 : index
    %6 = vector.load %arg3[%c0_5, %c0_6] : memref<4x8xf32, #tpu.memory_space<vmem>>, vector<4x8xf32>
    %cst_7 = arith.constant dense<0.000000e+00> : vector<2x8xf32>
    %7 = tpu.matmul %4, %6, %cst_7 {dimension_numbers = #tpu.dot_dimension_numbers<[1], [0], [0], [1], [0, 0, 1, 1], [], []>} : vector<2x4xf32>, vector<4x8xf32>, vector<2x8xf32> -> vector<2x8xf32>
    %8 = arith.addf %5, %7 : vector<2x8xf32>
    %c0_8 = arith.constant 0 : index
    %c0_9 = arith.constant 0 : index
    %9 = vector.load %arg6[%c0_8, %c0_9] : memref<2x8xf32, #tpu.memory_space<vmem>>, vector<2x8xf32>
    tpu.vector_store %arg6[%c0_8, %c0_9], %8 {strides = array<i32>} : memref<2x8xf32, #tpu.memory_space<vmem>>, vector<2x8xf32>,
    %c0_10 = arith.constant 0 : index
    %c0_11 = arith.constant 0 : index
    %10 = vector.load %arg6[%c0_10, %c0_11] : memref<2x8xf32, #tpu.memory_space<vmem>>, vector<2x8xf32>
    %c0_12 = arith.constant 0 : index
    %c0_13 = arith.constant 0 : index
    %11 = vector.load %arg4[%c0_12, %c0_13] : memref<1x8xf32, #tpu.memory_space<vmem>>, vector<1x8xf32>
    %12 = vector.broadcast %11 : vector<1x8xf32> to vector<2x8xf32>
    %13 = arith.addf %10, %12 : vector<2x8xf32>
    %c0_14 = arith.constant 0 : index
    %c0_15 = arith.constant 0 : index
    %14 = vector.load %arg5[%c0_14, %c0_15] : memref<2x8xf32, #tpu.memory_space<vmem>>, vector<2x8xf32>
    tpu.vector_store %arg5[%c0_14, %c0_15], %13 {strides = array<i32>} : memref<2x8xf32, #tpu.memory_space<vmem>>, vector<2x8xf32>,
    return
  }
  func.func @transform_0(%arg0: i32, %arg1: i32) -> (i32, i32, i32) {
    %c0_i32 = arith.constant 0 : i32
    %c0_i32_0 = arith.constant 0 : i32
    return %arg0, %arg1, %c0_i32 : i32, i32, i32
  }
  func.func @transform_1(%arg0: i32, %arg1: i32) -> (i32, i32) {
    %c0_i32 = arith.constant 0 : i32
    %c0_i32_0 = arith.constant 0 : i32
    return %arg1, %c0_i32 : i32, i32
  }
  func.func @transform_2(%arg0: i32, %arg1: i32) -> (i32, i32) {
    %c0_i32 = arith.constant 0 : i32
    %c0_i32_0 = arith.constant 0 : i32
    %c0_i32_1 = arith.constant 0 : i32
    return %c0_i32, %c0_i32_0 : i32, i32
  }
  func.func @transform_3(%arg0: i32, %arg1: i32) -> (i32, i32) {
    %c0_i32 = arith.constant 0 : i32
    %c0_i32_0 = arith.constant 0 : i32
    return %arg0, %c0_i32 : i32, i32
  }
}

</mosaic_0001>

<bundles_post_ra>
// kernel: tpu_custom_call.1
= control target key start
LH: loop header
LB: loop body
LE: loop exit
PB: predicated region body
PF: predicated region fallthrough
CT: control target
= control target key end

     0   :  { %8 = vsyncpa [#allocation4], 0  ;;  %s352_s0 = inlined_call_operand.hbm [shape: f32[2,4,256], index: 0, kind: input, shape index: {}]   ;;  %s353_s1 = inlined_call_operand.hbm [shape: f32[4,8], index: 1, kind: input, shape index: {}]   ;;  %s354_s2 = inlined_call_operand.vmem [shape: f32[1,8], index: 2, kind: input, shape index: {}]   ;;  %s355_s3 = inlined_call_operand.hbm [shape: f32[2,8], index: 3, kind: output, shape index: {}]  }
   0x1   :  { %9 = vsyncpa [#allocation7], 0 }
   0x2   :  { %10 = vsyncpa [#allocation5], 0  ;;  %s278_s12 = smov [#allocation3]   ;;  %s206_s16 = scalar_lea.hbm %s352_s0, 256 }
   0x3   :  { %s16_s13 = sshll.u32 %s278_s12, 4  ;;  %p207_p0 = scmp.ne.s32.totalorder %s352_s0, %s206_s16  ;;  %s17_s13 = int_to_ptr.vmem [resolvable:$true] %s16_s13 }
   0x4   :  { %p210_p1 = scmp.lt.u32.totalorder %s206_s16, %s352_s0 }
   0x6   :  { %p212_p2 = pnand %p210_p1, %p207_p0 }
   0x8   :  { %215 = shalt.err (!%p212_p2)
}
   0x9   :  { %s216_s21 = scalar_lea.vmem %s17_s13, 256  ;;  %p221_p4 = scmp.lt.s32.totalorder %s17_s13, %s17_s13 }
   0xa   :  { %p217_p3 = scmp.ne.s32.totalorder %s17_s13, %s216_s21  ;;  %p222_p5 = scmp.lt.s32.totalorder %s216_s21, %s216_s21 }
   0xc   :  { %p223_p6 = por %p222_p5, %p221_p4 }
   0xe   :  { %p224_p7 = pnand %p223_p6, %p217_p3 }
  0x10   :  { %227 = shalt.err (!%p224_p7)
}
  0x11   :  { %s279_s22 = smov 128   ;;  %s280_s23 = smov 8  }
  0x12   :  { %22 = dma.hbm_to_vmem [thread:$0]  %s352_s0, 256, %s17_s13, [#allocation4], %s279_s22, %s279_s22, %s280_s23  }
  0x13   :  { %s281_s26 = smov [#allocation6]   ;;  %s228_s30 = scalar_lea.hbm %s353_s1, 64 }
  0x14   :  { %s29_s27 = sshll.u32 %s281_s26, 4  ;;  %p229_p8 = scmp.ne.s32.totalorder %s353_s1, %s228_s30  ;;  %s30_s27 = int_to_ptr.vmem [resolvable:$true] %s29_s27 }
  0x15   :  { %p232_p9 = scmp.lt.u32.totalorder %s228_s30, %s353_s1 }
  0x17   :  { %p234_p10 = pnand %p232_p9, %p229_p8 }
  0x19   :  { %237 = shalt.err (!%p234_p10)
}
  0x1a   :  { %s238_s8 = scalar_lea.vmem %s30_s27, 64  ;;  %p243_p12 = scmp.lt.s32.totalorder %s30_s27, %s30_s27 }
  0x1b   :  { %p239_p11 = scmp.ne.s32.totalorder %s30_s27, %s238_s8  ;;  %p244_p13 = scmp.lt.s32.totalorder %s238_s8, %s238_s8 }
  0x1d   :  { %p245_p0 = por %p244_p13, %p243_p12 }
  0x1f   :  { %p246_p1 = pnand %p245_p0, %p239_p11 }
  0x21   :  { %249 = shalt.err (!%p246_p1)
}
  0x22   :  { %32 = dma.hbm_to_vmem [thread:$0]  %s353_s1, 64, %s30_s27, [#allocation7]  }
  0x23   :  { %272 = dma.done.wait [#allocation4], 256  }
  0x24   :  { %273 = vsyncadd [#allocation4], 4294967040 }
  0x25   :  { %274 = dma.done.wait [#allocation7], 64  }
  0x26   :  { %275 = vsyncadd [#allocation7], 4294967232  ;;  %vm55_vm0 = vcmask 1043456   ;;  %v47_v0 = vld [vmem:[#allocation3] sm:$0xff]  ;;  %v48_v1 = vld [vmem:[#allocation3 + $0x8] sm:$0xff]  ;;  %vm45_vm1 = vcmask 58368   ;;  %v70_v12 = vlaneseq }
  0x27   :  { %v51_v2 = vcombine.high %v47_v0, %v47_v0  ;;  %v56_v3 = vsel %vm55_vm0, %v47_v0, 0.0  ;;  %v52_v4 = vcombine.high %v48_v1, %v48_v1  ;;  %v61_v6 = vsel %vm55_vm0, %v48_v1, 0.0  ;;  %v67_v10 = vld [vmem:[#allocation6] sm:$0xf]  ;;  %v189_v25 = vld [vmem:[%s354_s2] ss:$0 sm:$0xff] }
  0x28   :  { %v282_v11 = vmov 0.0   ;;  %vm283_vm2 = vmmov 0   ;;  %v71_v13 = vand.u32 127, %v70_v12  ;;  %v73_v14 = vshrl.u32 %v70_v12, 7  ;;  %s284_s11 = smov [#allocation8]  }
  0x29   :  { %v57_v5 = vsel %vm55_vm0, %v51_v2, 0.0  ;;  %v62_v7 = vsel %vm55_vm0, %v52_v4, 0.0  ;;  %46 = vst.msk [vmem:[#allocation2] sm:$0x3] %vm45_vm1, %v282_v11  ;;  %192 = vmatprep.subr.mxu0 %v282_v11  ;;  %194 = vmatprep.mubr.msk.f32.mxu0 %vm283_vm2, %v282_v11  ;;  %vm80_vm3 = vcmask 1041409   ;;  %vm82_vm4 = vcmask 31744  }
  0x2a   :  { %v58_v8 = vadd.f32 %v57_v5, %v56_v3  ;;  %v63_v9 = vadd.f32 %v62_v7, %v61_v6  ;;  %193 = vmatpush3.msk.msra.mxu0 %vm55_vm0, %v67_v10  ;;  %v74_v16 = vsub.s32 %v71_v13, %v73_v14  ;;  %s177_s12 = sshll.u32 %s284_s11, 4  ;;  %s178_s12 = int_to_ptr.vmem [resolvable:$true] %s177_s12 }
  0x2b   :  { %s250_s13 = scalar_lea.vmem %s178_s12, 32  ;;  %p255_p3 = scmp.lt.s32.totalorder %s178_s12, %s178_s12 }
  0x2c   :  { %59 = vadd.xlane.f32.xlu0 %v58_v8  ;;  %p251_p2 = scmp.ne.s32.totalorder %s178_s12, %s250_s13  ;;  %p256_p4 = scmp.lt.s32.totalorder %s250_s13, %s250_s13 }
  0x2e   :  { %p257_p5 = por %p256_p4, %p255_p3 }
  0x30   :  { %64 = vadd.xlane.f32.xlu0 %v63_v9  ;;  %v66_v21 = vld [vmem:[#allocation2] sm:$0x3]  ;;  %p258_p6 = pnand %p257_p5, %p251_p2 }
  0xb9   :  { %v60_v15 = vpop.xlane.xlu0 %59 }
  0xba   :  { %v75_v18 = vrot.slane %v60_v15, %v74_v16 }
  0xbd   :  { %v65_v17 = vpop.xlane.xlu0 %64 }
  0xbe   :  { %v79_v19 = vrot.slane %v65_v17, %v74_v16 }
  0xc0   :  { %v81_v20 = vsel %vm80_vm3, %v79_v19, %v75_v18 }
  0xc1   :  { %195 = vmatmul.mubr.msk.f32.vlgmr.msra.gmra.mrb[0].mxu0 %vm82_vm4, %v81_v20 }
 0x194   :  { %v154_v22 = vpop.f32.mrb[0].mxu0 }
 0x195   :  { %v158_v23 = vadd.f32 %v154_v22, %v66_v21  ;;  %v196_v24 = vpop.f32.mrb[1].mxu0 }
 0x197   :  { %160 = vst.msk [vmem:[#allocation2] sm:$0x3] %vm45_vm1, %v158_v23 }
 0x19e   :  { %v161_v26 = vld [vmem:[#allocation2] sm:$0x3] }
 0x19f   :  { %v169_v27 = vadd.f32 %v189_v25, %v161_v26 }
 0x1a1   :  { %170 = vst.msk [vmem:[#allocation8] sm:$0x3] %vm45_vm1, %v169_v27 }
 0x1a2   :  { %261 = shalt.err (!%p258_p6)
}
 0x1a3   :  { %s262_s16 = scalar_lea.hbm %s355_s3, 32 }
 0x1a4   :  { %p263_p7 = scmp.ne.s32.totalorder %s355_s3, %s262_s16  ;;  %p266_p8 = scmp.lt.u32.totalorder %s262_s16, %s355_s3 }
 0x1a6   :  { %p268_p9 = pnand %p266_p8, %p263_p7 }
 0x1a8   :  { %271 = shalt.err (!%p268_p9)
}
 0x1a9   :  { %180 = dma.vmem_to_hbm [thread:$0]  %s178_s12, 32, %s355_s3, [#allocation5]  }
 0x1aa   :  { %276 = dma.done.wait [#allocation5], 32  }
 0x1ab   :  { %277 = vsyncadd [#allocation5], 4294967264 }
 0x1ac   :  { %184 = vsyncpa [#allocation4], 1 }
 0x1ad   :  { %185 = vsyncpa [#allocation7], 1 }
 0x1ae   :  { %186 = vsyncpa [#allocation5], 1 }

</bundles_post_ra>
